<compile_context>
chip_gen: v6e
topology: v6e:2x2x1
jax: 0.10.0
libtpu: 0.0.40
codegen_flags: <defaults>
</compile_context>

<pallas_src>
import functools
import math

import jax
import jax.numpy as jnp
from jax.experimental import pallas as pl
from jax.experimental.pallas import tpu as pltpu


# --------------------------------------------------------------------------- #
# Kernel                                                                      #
# --------------------------------------------------------------------------- #
def _nf_kernel(d_model,
               x_ref, s_ref, w0t_ref, w1t_ref, bc_ref, wft_ref, bft_ref,
               out_ref, s_out_ref):
    """One batch-tile per grid step, transposed layout: time on sublanes,
    rows r = b*C + o on lanes (R = TB*C, a multiple of 128)."""
    x = x_ref[...]                                # (L, R) f32
    L, R = x.shape
    J = s_ref.shape[0]                            # out_len
    mm_dt = w0t_ref.dtype                         # f32 (default) or bf16

    # Conv1d(kernel=2) + leading duplicate:
    #   h[t] = relu(x[t-1] @ W0bd^T + x[t] @ W1bd^T + b)  for t >= 1
    #   h[0] = h[1]
    # x[t-1] comes from one sublane roll; the wrapped row 0 is garbage and is
    # fixed afterwards by duplicating row 1 into row 0 (sublane select).
    x_mm = x.astype(mm_dt)
    x_prev = pltpu.roll(x_mm, shift=1, axis=0)    # x[t-1] (wraps at t == 0)
    h = jnp.dot(x_prev, w0t_ref[...], preferred_element_type=jnp.float32)
    h = h + jnp.dot(x_mm, w1t_ref[...], preferred_element_type=jnp.float32)
    h = jnp.maximum(h + bc_ref[...], 0.0)         # (L, R) f32
    t_idx = jax.lax.broadcasted_iota(jnp.int32, (L, R), 0)
    h = jnp.where(t_idx == 0, h[1:2, :], h)       # h[0] := h[1]

    # Fused mu/sigma head: one (2J, L) @ (L, R) matmul, split on sublanes.
    ms = jnp.dot(wft_ref[...], h.astype(mm_dt), preferred_element_type=jnp.float32)
    ms = ms + bft_ref[...]                        # (2J, R)
    mu = ms[:J, :]
    sg = ms[J:, :]
    s_new = mu + jnp.exp(0.5 * sg) * s_ref[...] * 0.1       # (J, R) f32

    s_out_ref[...] = s_new.astype(s_out_ref.dtype)          # lane-dense store

    # output = x + 0.1 * cat(h[:d_model], s_new) along time (sublanes),
    # written as ONE lane-dense full-block store.
    h2 = jnp.concatenate([h[:d_model, :], s_new], axis=0)   # (L, R)
    out_ref[...] = (x + 0.1 * h2).astype(out_ref.dtype)


# --------------------------------------------------------------------------- #
# Tiling plan                                                                 #
# --------------------------------------------------------------------------- #
def _default_target_rows():
    """v6e/v7x have a 2x256 MXU -> target ~256 rows; v5e is 128-wide."""
    try:
        info = pltpu.get_tpu_info()
        name = str(getattr(info, "chip_version", getattr(info, "version", ""))).lower()
    except Exception:
        name = ""
    return 128 if "v5" in name else 256


def _plan_tiles(batch, c_out, target_rows, lane=128):
    """Pick (batch_tile, padded_batch).  Rows per grid step R = tb*c_out is a
    multiple of 128 (lane-dense, unmasked stores) and ~target_rows; no forced
    grid split; kron weight growth is capped near target_rows."""
    if c_out >= target_rows:
        # TODO(synk): very large c_out with c_out % 128 != 0 falls back to a
        # single whole-batch tile (kron grows with B*C); not hit at these sizes.
        if c_out % lane == 0 and batch > 1:
            return 1, batch
        return batch, batch
    step = lane // math.gcd(c_out, lane)              # min batches per 128 lanes
    b_lane = -(-batch // step) * step                 # batch padded for lane density
    tb = max(step, (target_rows // (step * c_out)) * step)
    tb = min(tb, b_lane)                              # never bigger than padded batch
    b_pad = -(-batch // tb) * tb
    return tb, b_pad


# --------------------------------------------------------------------------- #
# One-time parameter packing (hoisted out of the per-call path)               #
# --------------------------------------------------------------------------- #
def prepare_normal_flow_params(params, *, batch, c_out, d_model, out_len,
                               target_rows=None, matmul_dtype=jnp.float32):
    """Packs the layer weights into the kernel's transposed / block-diagonal
    layout once.  Re-run only if the batch size changes."""
    if target_rows is None:
        target_rows = _default_target_rows()
    tb, b_pad = _plan_tiles(batch, c_out, target_rows)
    R = tb * c_out

    eye = jnp.eye(tb, dtype=jnp.float32)
    # h_T = x_prev_T @ W0bd^T + x_T @ W1bd^T  with W0bd^T = kron(I, W0^T).
    w0t = jnp.kron(eye, params["conv_w"][:, :, 0].T).astype(matmul_dtype)   # (R, R)
    w1t = jnp.kron(eye, params["conv_w"][:, :, 1].T).astype(matmul_dtype)   # (R, R)
    bc = jnp.tile(params["conv_b"], tb).reshape(1, R).astype(jnp.float32)   # (1, R)

    # Fused mu/sigma head: ms_T = wft @ h_T + bft.
    wft = jnp.concatenate([params["mu_w"], params["sigma_w"]],
                          axis=0).astype(matmul_dtype)                       # (2J, L)
    bft = jnp.concatenate([params["mu_b"], params["sigma_b"]]
                          ).reshape(2 * out_len, 1).astype(jnp.float32)      # (2J, 1)

    return dict(w0t=w0t, w1t=w1t, bc=bc, wft=wft, bft=bft,
                tb=tb, b_pad=b_pad, d_model=d_model, out_len=out_len)


# --------------------------------------------------------------------------- #
# Forward                                                                     #
# --------------------------------------------------------------------------- #
def _const_spec(arr):
    """Full-block constant input; single-buffered when the JAX version
    supports pipeline_mode (constant-index blocks are never re-DMA'd)."""
    nd = arr.ndim
    idx = lambda b, _nd=nd: (0,) * _nd
    try:
        return pl.BlockSpec(arr.shape, idx, pipeline_mode=pl.Buffered(1))
    except (TypeError, AttributeError, ValueError):
        return pl.BlockSpec(arr.shape, idx)


@functools.partial(jax.jit, static_argnames=("d_model", "out_len", "tb", "b_pad"))
def _forward(x, sample, w0t, w1t, bc, wft, bft, *, d_model, out_len, tb, b_pad):
    B, C, L = x.shape
    assert L == d_model + out_len
    assert sample.shape == (B, C, out_len)
    assert b_pad >= B and b_pad % tb == 0, "re-run prepare_normal_flow_params for this batch"

    R = tb * C                        # rows (lanes) per grid step
    R_total = b_pad * C
    assert w0t.shape == (R, R)
    grid = (b_pad // tb,)

    # Layout plumbing: rows = batch*channel on lanes, time on sublanes.
    x_rows = x.reshape(B * C, L)
    s_rows = sample.reshape(B * C, out_len)
    pad = R_total - B * C
    if pad:
        x_rows = jnp.pad(x_rows, ((0, pad), (0, 0)))
        s_rows = jnp.pad(s_rows, ((0, pad), (0, 0)))
    x_t = x_rows.T                    # (L, R_total)
    s_t = s_rows.T                    # (J, R_total)

    kernel = functools.partial(_nf_kernel, d_model)

    def row_spec(rows):
        return pl.BlockSpec((rows, R), lambda b: (0, b))

    out_t, s_out_t = pl.pallas_call(
        kernel,
        out_shape=(jax.ShapeDtypeStruct((L, R_total), x.dtype),
                   jax.ShapeDtypeStruct((out_len, R_total), x.dtype)),
        grid=grid,
        in_specs=[
            row_spec(L),              # x_t
            row_spec(out_len),        # sample_t
            _const_spec(w0t), _const_spec(w1t), _const_spec(bc),
            _const_spec(wft), _const_spec(bft),
        ],
        out_specs=(row_spec(L), row_spec(out_len)),
        compiler_params=pltpu.CompilerParams(dimension_semantics=("parallel",)),
    )(x_t, s_t, w0t, w1t, bc, wft, bft)

    out = out_t.T[:B * C].reshape(B, C, L)
    s_new = s_out_t.T[:B * C].reshape(B, C, out_len)
    return out, s_new


def normal_flow_layer(x, sample, packed):
    return _forward(x, sample,
                    packed["w0t"], packed["w1t"], packed["bc"],
                    packed["wft"], packed["bft"],
                    d_model=packed["d_model"], out_len=packed["out_len"],
                    tb=packed["tb"], b_pad=packed["b_pad"])


# --------------------------------------------------------------------------- #
# Pure-JAX reference mirroring the PyTorch forward                            #
# --------------------------------------------------------------------------- #
def ref_forward(x, sample, params, *, d_model, out_len):
    W, bc = params["conv_w"], params["conv_b"]
    y = (jnp.einsum("oc,bcl->bol", W[:, :, 0], x[:, :, :-1]) +
         jnp.einsum("oc,bcl->bol", W[:, :, 1], x[:, :, 1:]) +
         bc[None, :, None])
    y = jnp.maximum(y, 0.0)
    h = jnp.concatenate([y[:, :, :1], y], axis=2)
    mu = h @ params["mu_w"].T + params["mu_b"]
    sg = h @ params["sigma_w"].T + params["sigma_b"]
    s = mu + jnp.exp(0.5 * sg) * sample * 0.1
    h2 = jnp.concatenate([h[:, :, :d_model], s], axis=2)
    return x + 0.1 * h2, s


if __name__ == "__main__":
    B, C, d_model, out_len = 4, 8, 24, 8
    L = d_model + out_len

    key = jax.random.PRNGKey(0)
    ks = jax.random.split(key, 8)
    params = dict(
        conv_w=jax.random.normal(ks[0], (C, C, 2), jnp.float32) * 0.1,
        conv_b=jax.random.normal(ks[1], (C,), jnp.float32) * 0.1,
        mu_w=jax.random.normal(ks[2], (out_len, L), jnp.float32) * 0.1,
        mu_b=jax.random.normal(ks[3], (out_len,), jnp.float32) * 0.1,
        sigma_w=jax.random.normal(ks[4], (out_len, L), jnp.float32) * 0.1,
        sigma_b=jax.random.normal(ks[5], (out_len,), jnp.float32) * 0.1,
    )
    x = jax.random.normal(ks[6], (B, C, L), jnp.float32)
    sample = jax.random.normal(ks[7], (B, C, out_len), jnp.float32)

    # One-time weight packing (f32 matmul operands so the 1e-5 check stays
    # exact; pass matmul_dtype=jnp.bfloat16 on v6e/v7x for the bandwidth win).
    packed = prepare_normal_flow_params(params, batch=B, c_out=C,
                                        d_model=d_model, out_len=out_len)

    out, s_new = normal_flow_layer(x, sample, packed)
    jax.block_until_ready((out, s_new))

    ref_out, ref_s = ref_forward(x, sample, params, d_model=d_model, out_len=out_len)
    assert jnp.allclose(out, ref_out, atol=1e-5, rtol=1e-5), "output mismatch"
    assert jnp.allclose(s_new, ref_s, atol=1e-5, rtol=1e-5), "sample mismatch"
    print("KERNEL_OK")
</pallas_src>

<mosaic_0001>
module attributes {stable_mosaic.version = 11 : i64} {
  func.func @_nf_kernel(%arg0: i32, %arg1: memref<32x128xf32, #tpu.memory_space<vmem>>, %arg2: memref<8x128xf32, #tpu.memory_space<vmem>>, %arg3: memref<128x128xf32, #tpu.memory_space<vmem>>, %arg4: memref<128x128xf32, #tpu.memory_space<vmem>>, %arg5: memref<1x128xf32, #tpu.memory_space<vmem>>, %arg6: memref<16x32xf32, #tpu.memory_space<vmem>>, %arg7: memref<16x1xf32, #tpu.memory_space<vmem>>, %arg8: memref<32x128xf32, #tpu.memory_space<vmem>>, %arg9: memref<8x128xf32, #tpu.memory_space<vmem>>) attributes {dimension_semantics = [#tpu.dimension_semantics<parallel>], iteration_bounds = array<i64: 1>, scalar_prefetch = 0 : i64, scratch_operands = 0 : i64, tpu.core_type = #tpu.core_type<tc>, window_params = [{transform_indices = @transform_0, window_bounds = array<i64: 32, 128>}, {transform_indices = @transform_1, window_bounds = array<i64: 8, 128>}, {pipeline_mode = #tpu.pipeline_mode<synchronous>, transform_indices = @transform_2, window_bounds = array<i64: 128, 128>}, {pipeline_mode = #tpu.pipeline_mode<synchronous>, transform_indices = @transform_3, window_bounds = array<i64: 128, 128>}, {pipeline_mode = #tpu.pipeline_mode<synchronous>, transform_indices = @transform_4, window_bounds = array<i64: 1, 128>}, {pipeline_mode = #tpu.pipeline_mode<synchronous>, transform_indices = @transform_5, window_bounds = array<i64: 16, 32>}, {pipeline_mode = #tpu.pipeline_mode<synchronous>, transform_indices = @transform_6, window_bounds = array<i64: 16, 1>}, {transform_indices = @transform_7, window_bounds = array<i64: 32, 128>}, {transform_indices = @transform_8, window_bounds = array<i64: 8, 128>}]} {
    %c0 = arith.constant 0 : index
    %c0_0 = arith.constant 0 : index
    %0 = vector.load %arg1[%c0, %c0_0] : memref<32x128xf32, #tpu.memory_space<vmem>>, vector<32x128xf32>
    %c1_i32 = arith.constant 1 : i32
    %1 = tpu.dynamic_rotate %0 by %c1_i32 dim 0 : vector<32x128xf32>, i32 -> vector<32x128xf32>
    %c0_1 = arith.constant 0 : index
    %c0_2 = arith.constant 0 : index
    %2 = vector.load %arg3[%c0_1, %c0_2] : memref<128x128xf32, #tpu.memory_space<vmem>>, vector<128x128xf32>
    %cst = arith.constant dense<0.000000e+00> : vector<32x128xf32>
    %3 = tpu.matmul %1, %2, %cst {dimension_numbers = #tpu.dot_dimension_numbers<[1], [0], [0], [1], [0, 0, 1, 1], [], []>} : vector<32x128xf32>, vector<128x128xf32>, vector<32x128xf32> -> vector<32x128xf32>
    %c0_3 = arith.constant 0 : index
    %c0_4 = arith.constant 0 : index
    %4 = vector.load %arg4[%c0_3, %c0_4] : memref<128x128xf32, #tpu.memory_space<vmem>>, vector<128x128xf32>
    %cst_5 = arith.constant dense<0.000000e+00> : vector<32x128xf32>
    %5 = tpu.matmul %0, %4, %cst_5 {dimension_numbers = #tpu.dot_dimension_numbers<[1], [0], [0], [1], [0, 0, 1, 1], [], []>} : vector<32x128xf32>, vector<128x128xf32>, vector<32x128xf32> -> vector<32x128xf32>
    %6 = arith.addf %3, %5 : vector<32x128xf32>
    %c0_6 = arith.constant 0 : index
    %c0_7 = arith.constant 0 : index
    %7 = vector.load %arg5[%c0_6, %c0_7] : memref<1x128xf32, #tpu.memory_space<vmem>>, vector<1x128xf32>
    %8 = vector.broadcast %7 : vector<1x128xf32> to vector<32x128xf32>
    %9 = arith.addf %6, %8 : vector<32x128xf32>
    %cst_8 = arith.constant 0.000000e+00 : f32
    %10 = vector.broadcast %cst_8 : f32 to vector<32x128xf32>
    %11 = arith.maximumf %9, %10 : vector<32x128xf32>
    %12 = tpu.iota {dimensions = array<i32: 0>} : vector<32x128xi32>
    %c0_i32 = arith.constant 0 : i32
    %13 = vector.broadcast %c0_i32 : i32 to vector<32x128xi32>
    %14 = arith.cmpi eq, %12, %13 : vector<32x128xi32>
    %15 = vector.extract_strided_slice %11 {offsets = [1, 0], sizes = [1, 128], strides = [1, 1]} : vector<32x128xf32> to vector<1x128xf32>
    %16 = vector.shape_cast %15 : vector<1x128xf32> to vector<1x128xf32>
    %17 = vector.broadcast %16 : vector<1x128xf32> to vector<32x128xf32>
    %18 = arith.select %14, %17, %11 : vector<32x128xi1>, vector<32x128xf32>
    %c0_9 = arith.constant 0 : index
    %c0_10 = arith.constant 0 : index
    %19 = vector.load %arg6[%c0_9, %c0_10] : memref<16x32xf32, #tpu.memory_space<vmem>>, vector<16x32xf32>
    %cst_11 = arith.constant dense<0.000000e+00> : vector<16x128xf32>
    %20 = tpu.matmul %19, %18, %cst_11 {dimension_numbers = #tpu.dot_dimension_numbers<[1], [0], [0], [1], [0, 0, 1, 1], [], []>} : vector<16x32xf32>, vector<32x128xf32>, vector<16x128xf32> -> vector<16x128xf32>
    %c0_12 = arith.constant 0 : index
    %c0_13 = arith.constant 0 : index
    %21 = vector.load %arg7[%c0_12, %c0_13] : memref<16x1xf32, #tpu.memory_space<vmem>>, vector<16x1xf32>
    %22 = vector.broadcast %21 : vector<16x1xf32> to vector<16x128xf32>
    %23 = arith.addf %20, %22 : vector<16x128xf32>
    %24 = vector.extract_strided_slice %23 {offsets = [0, 0], sizes = [8, 128], strides = [1, 1]} : vector<16x128xf32> to vector<8x128xf32>
    %25 = vector.extract_strided_slice %23 {offsets = [8, 0], sizes = [8, 128], strides = [1, 1]} : vector<16x128xf32> to vector<8x128xf32>
    %cst_14 = arith.constant 5.000000e-01 : f32
    %26 = vector.broadcast %cst_14 : f32 to vector<8x128xf32>
    %27 = arith.mulf %26, %25 : vector<8x128xf32>
    %28 = math.exp %27 : vector<8x128xf32>
    %c0_15 = arith.constant 0 : index
    %c0_16 = arith.constant 0 : index
    %29 = vector.load %arg2[%c0_15, %c0_16] : memref<8x128xf32, #tpu.memory_space<vmem>>, vector<8x128xf32>
    %30 = arith.mulf %28, %29 : vector<8x128xf32>
    %cst_17 = arith.constant 1.000000e-01 : f32
    %31 = vector.broadcast %cst_17 : f32 to vector<8x128xf32>
    %32 = arith.mulf %30, %31 : vector<8x128xf32>
    %33 = arith.addf %24, %32 : vector<8x128xf32>
    %c0_18 = arith.constant 0 : index
    %c0_19 = arith.constant 0 : index
    %34 = vector.load %arg9[%c0_18, %c0_19] : memref<8x128xf32, #tpu.memory_space<vmem>>, vector<8x128xf32>
    tpu.vector_store %arg9[%c0_18, %c0_19], %33 {strides = array<i32>} : memref<8x128xf32, #tpu.memory_space<vmem>>, vector<8x128xf32>,
    %35 = vector.extract_strided_slice %18 {offsets = [0, 0], sizes = [24, 128], strides = [1, 1]} : vector<32x128xf32> to vector<24x128xf32>
    %36 = tpu.concatenate %35, %33 in 0 : vector<24x128xf32>, vector<8x128xf32> -> vector<32x128xf32>
    %cst_20 = arith.constant 1.000000e-01 : f32
    %37 = vector.broadcast %cst_20 : f32 to vector<32x128xf32>
    %38 = arith.mulf %37, %36 : vector<32x128xf32>
    %39 = arith.addf %0, %38 : vector<32x128xf32>
    %c0_21 = arith.constant 0 : index
    %c0_22 = arith.constant 0 : index
    %40 = vector.load %arg8[%c0_21, %c0_22] : memref<32x128xf32, #tpu.memory_space<vmem>>, vector<32x128xf32>
    tpu.vector_store %arg8[%c0_21, %c0_22], %39 {strides = array<i32>} : memref<32x128xf32, #tpu.memory_space<vmem>>, vector<32x128xf32>,
    return
  }
  func.func @transform_0(%arg0: i32) -> (i32, i32) {
    %c0_i32 = arith.constant 0 : i32
    %c0_i32_0 = arith.constant 0 : i32
    return %c0_i32, %arg0 : i32, i32
  }
  func.func @transform_1(%arg0: i32) -> (i32, i32) {
    %c0_i32 = arith.constant 0 : i32
    %c0_i32_0 = arith.constant 0 : i32
    return %c0_i32, %arg0 : i32, i32
  }
  func.func @transform_2(%arg0: i32) -> (i32, i32) {
    %c0_i32 = arith.constant 0 : i32
    %c0_i32_0 = arith.constant 0 : i32
    %c0_i32_1 = arith.constant 0 : i32
    return %c0_i32, %c0_i32_0 : i32, i32
  }
  func.func @transform_3(%arg0: i32) -> (i32, i32) {
    %c0_i32 = arith.constant 0 : i32
    %c0_i32_0 = arith.constant 0 : i32
    %c0_i32_1 = arith.constant 0 : i32
    return %c0_i32, %c0_i32_0 : i32, i32
  }
  func.func @transform_4(%arg0: i32) -> (i32, i32) {
    %c0_i32 = arith.constant 0 : i32
    %c0_i32_0 = arith.constant 0 : i32
    %c0_i32_1 = arith.constant 0 : i32
    return %c0_i32, %c0_i32_0 : i32, i32
  }
  func.func @transform_5(%arg0: i32) -> (i32, i32) {
    %c0_i32 = arith.constant 0 : i32
    %c0_i32_0 = arith.constant 0 : i32
    %c0_i32_1 = arith.constant 0 : i32
    return %c0_i32, %c0_i32_0 : i32, i32
  }
  func.func @transform_6(%arg0: i32) -> (i32, i32) {
    %c0_i32 = arith.constant 0 : i32
    %c0_i32_0 = arith.constant 0 : i32
    %c0_i32_1 = arith.constant 0 : i32
    return %c0_i32, %c0_i32_0 : i32, i32
  }
  func.func @transform_7(%arg0: i32) -> (i32, i32) {
    %c0_i32 = arith.constant 0 : i32
    %c0_i32_0 = arith.constant 0 : i32
    return %c0_i32, %arg0 : i32, i32
  }
  func.func @transform_8(%arg0: i32) -> (i32, i32) {
    %c0_i32 = arith.constant 0 : i32
    %c0_i32_0 = arith.constant 0 : i32
    return %c0_i32, %arg0 : i32, i32
  }
}

</mosaic_0001>

<bundles_post_ra>
// kernel: _forward.1
= control target key start
LH: loop header
LB: loop body
LE: loop exit
PB: predicated region body
PF: predicated region fallthrough
CT: control target
= control target key end

     0   :  { %14 = vsyncpa [#allocation3], 0  ;;  %s579_s27 = smov [#allocation2]   ;;  %s759_s0 = inlined_call_operand.vmem [shape: f32[32,128], index: 0, kind: input, shape index: {}]   ;;  %s760_s1 = inlined_call_operand.vmem [shape: f32[8,128], index: 1, kind: input, shape index: {}]   ;;  %s761_s2 = inlined_call_operand.vmem [shape: f32[128,128], index: 2, kind: input, shape index: {}]   ;;  %s762_s3 = inlined_call_operand.hbm [shape: f32[128,128], index: 3, kind: input, shape index: {}]   ;;  %s763_s4 = inlined_call_operand.vmem [shape: f32[1,128], index: 4, kind: input, shape index: {}]   ;;  %s764_s5 = inlined_call_operand.vmem [shape: f32[16,32], index: 5, kind: input, shape index: {}]   ;;  %s765_s6 = inlined_call_operand.vmem [shape: f32[16,1], index: 6, kind: input, shape index: {}]   ;;  %s766_s7 = inlined_call_operand.vmem [shape: f32[32,128], index: 7, kind: output, shape index: {0}]   ;;  %s767_s8 = inlined_call_operand.vmem [shape: f32[8,128], index: 8, kind: output, shape index: {1}]  }
   0x1   :  { %s26_s28 = sshll.u32 %s579_s27, 4  ;;  %s27_s28 = int_to_ptr.vmem [resolvable:$true] %s26_s28 }
   0x2   :  { %s565_s29 = scalar_lea.vmem %s27_s28, 2048  ;;  %p570_p1 = scmp.lt.s32.totalorder %s27_s28, %s27_s28 }
   0x3   :  { %p566_p0 = scmp.ne.s32.totalorder %s27_s28, %s565_s29  ;;  %p571_p2 = scmp.lt.s32.totalorder %s565_s29, %s565_s29 }
   0x5   :  { %p572_p3 = por %p571_p2, %p570_p1 }
   0x7   :  { %p573_p4 = pnand %p572_p3, %p566_p0 }
   0x9   :  { %576 = shalt.err (!%p573_p4)
}
   0xa   :  { %s580_s30 = smov 128   ;;  %s581_s9 = smov 8  }
   0xb   :  { %32 = dma.hbm_to_vmem [thread:$0]  %s762_s3, 2048, %s27_s28, [#allocation3], %s580_s30, %s580_s30, %s581_s9  }
   0xc   :  { %577 = dma.done.wait [#allocation3], 2048  }
   0xd   :  { %578 = vsyncadd [#allocation3], 4294965248  ;;  %v88_v0 = vld [vmem:[#allocation2 + $0x78] sm:$0xff]  ;;  %v87_v2 = vld [vmem:[#allocation2 + $0x70] sm:$0xff]  ;;  %v50_v22 = vlaneseq  ;;  %vm303_vm1 = vcmask 261120   ;;  %v582_v48 = vmov 0  }
   0xe   :  { %v72_v1 = vld [vmem:[%s761_s2 + $0x78] sm:$0xff]  ;;  %463 = vmatprep.subr.mxu0 %v88_v0  ;;  %v71_v3 = vld [vmem:[%s761_s2 + $0x70] sm:$0xff]  ;;  %v86_v4 = vld [vmem:[#allocation2 + $0x68] sm:$0xff]  ;;  %554 = vset.pattern.permute.xlu0 %v582_v48 }
   0xf   :  { %501 = vmatprep.subr.mxu1 %v72_v1  ;;  %464 = vmatpush3.msra.mxu0 %v88_v0  ;;  %v70_v5 = vld [vmem:[%s761_s2 + $0x68] sm:$0xff]  ;;  %v85_v6 = vld [vmem:[#allocation2 + $0x60] sm:$0xff]  ;;  %v84_v8 = vld [vmem:[#allocation2 + $0x58] sm:$0xff]  ;;  %v680_v29 = vshrl.u32 %v50_v22, 7 }
  0x10   :  { %502 = vmatpush3.msra.mxu1 %v72_v1  ;;  %465 = vmatprep.subr.mxu0 %v87_v2  ;;  %v69_v7 = vld [vmem:[%s761_s2 + $0x60] sm:$0xff]  ;;  %v68_v9 = vld [vmem:[%s761_s2 + $0x58] sm:$0xff]  ;;  %v83_v10 = vld [vmem:[#allocation2 + $0x50] sm:$0xff] }
  0x11   :  { %503 = vmatprep.subr.mxu1 %v71_v3  ;;  %466 = vmatpush3.msra.mxu0 %v87_v2  ;;  %v67_v11 = vld [vmem:[%s761_s2 + $0x50] sm:$0xff]  ;;  %v82_v12 = vld [vmem:[#allocation2 + $0x48] sm:$0xff]  ;;  %v81_v14 = vld [vmem:[#allocation2 + $0x40] sm:$0xff]  ;;  %vm52_vm0 = vcmp.lt.s32.totalorder %v680_v29, 1  ;;  %v283_v62 = vsub.s32 1, %v680_v29  ;;  %vm277_vm2 = vcmp.eq.s32.totalorder %v680_v29, 0 }
  0x12   :  { %504 = vmatpush3.msra.mxu1 %v71_v3  ;;  %467 = vmatprep.subr.mxu0 %v86_v4  ;;  %v66_v13 = vld [vmem:[%s761_s2 + $0x48] sm:$0xff]  ;;  %v65_v15 = vld [vmem:[%s761_s2 + $0x40] sm:$0xff]  ;;  %v80_v16 = vld [vmem:[#allocation2 + $0x38] sm:$0xff] }
  0x13   :  { %505 = vmatprep.subr.mxu1 %v70_v5  ;;  %468 = vmatpush3.msra.mxu0 %v86_v4  ;;  %v64_v17 = vld [vmem:[%s761_s2 + $0x38] sm:$0xff]  ;;  %v79_v18 = vld [vmem:[#allocation2 + $0x30] sm:$0xff]  ;;  %v78_v20 = vld [vmem:[#allocation2 + $0x28] sm:$0xff] }
  0x14   :  { %506 = vmatpush3.msra.mxu1 %v70_v5  ;;  %469 = vmatprep.subr.mxu0 %v85_v6  ;;  %v63_v19 = vld [vmem:[%s761_s2 + $0x30] sm:$0xff]  ;;  %v62_v21 = vld [vmem:[%s761_s2 + $0x28] sm:$0xff]  ;;  %v77_v23 = vld [vmem:[#allocation2 + $0x20] sm:$0xff] }
  0x15   :  { %507 = vmatprep.subr.mxu1 %v69_v7  ;;  %470 = vmatpush3.msra.mxu0 %v85_v6  ;;  %v61_v24 = vld [vmem:[%s761_s2 + $0x20] sm:$0xff]  ;;  %v76_v25 = vld [vmem:[#allocation2 + $0x18] sm:$0xff]  ;;  %v75_v30 = vld [vmem:[#allocation2 + $0x10] sm:$0xff] }
  0x16   :  { %508 = vmatpush3.msra.mxu1 %v69_v7  ;;  %471 = vmatprep.subr.mxu0 %v84_v8  ;;  %v60_v26 = vld [vmem:[%s761_s2 + $0x18] sm:$0xff]  ;;  %v673_v27 = vld [vmem:[%s759_s0] sm:$0xff]  ;;  %v59_v31 = vld [vmem:[%s761_s2 + $0x10] sm:$0xff] }
  0x17   :  { %509 = vmatprep.subr.mxu1 %v68_v9  ;;  %472 = vmatpush3.msra.mxu0 %v84_v8  ;;  %v678_v28 = vld [vmem:[%s759_s0 + $0x18] sm:$0xff]  ;;  %v688_v32 = vld [vmem:[%s759_s0 + $0x8] sm:$0xff]  ;;  %v693_v33 = vld [vmem:[%s759_s0 + $0x10] sm:$0xff]  ;;  %v46_v36 = vrot.slane %v673_v27, 7 }
  0x18   :  { %510 = vmatpush3.msra.mxu1 %v68_v9  ;;  %473 = vmatprep.subr.mxu0 %v83_v10  ;;  %v74_v34 = vld [vmem:[#allocation2 + $0x8] sm:$0xff]  ;;  %v49_v37 = vrot.slane %v678_v28, 7  ;;  %v47_v38 = vrot.slane %v688_v32, 7  ;;  %v73_v39 = vld [vmem:[#allocation2] sm:$0xff]  ;;  %v48_v41 = vrot.slane %v693_v33, 7 }
  0x19   :  { %511 = vmatprep.subr.mxu1 %v67_v11  ;;  %474 = vmatpush3.msra.mxu0 %v83_v10  ;;  %v58_v35 = vld [vmem:[%s761_s2 + $0x8] sm:$0xff]  ;;  %v57_v40 = vld [vmem:[%s761_s2] sm:$0xff] }
  0x1a   :  { %512 = vmatpush3.msra.mxu1 %v67_v11  ;;  %475 = vmatprep.subr.mxu0 %v82_v12  ;;  %v56_v42 = vsel %vm52_vm0, %v49_v37, %v46_v36  ;;  %v55_v43 = vsel %vm52_vm0, %v46_v36, %v47_v38  ;;  %v54_v44 = vsel %vm52_vm0, %v47_v38, %v48_v41  ;;  %v289_v46 = vld [vmem:[%s764_s5] sm:$0xff]  ;;  %v292_v47 = vld [vmem:[%s765_s6 + $0x8] sm:$0xff] }
  0x1b   :  { %513 = vmatprep.subr.mxu1 %v66_v13  ;;  %476 = vmatpush3.msra.mxu0 %v82_v12  ;;  %v53_v45 = vsel %vm52_vm0, %v48_v41, %v49_v37  ;;  %v291_v49 = vld [vmem:[%s765_s6] sm:$0xff] }
  0x1c   :  { %514 = vmatpush3.msra.mxu1 %v66_v13  ;;  %477 = vmatprep.subr.mxu0 %v81_v14  ;;  %v414_v52 = vld [vmem:[%s763_s4] ss:$0 sm:$0xff] }
  0x1d   :  { %515 = vmatprep.subr.mxu1 %v65_v15  ;;  %478 = vmatpush3.msra.mxu0 %v81_v14  ;;  %v388_v22 = vld [vmem:[%s760_s1] sm:$0xff] }
  0x1e   :  { %516 = vmatpush3.msra.mxu1 %v65_v15  ;;  %479 = vmatprep.subr.mxu0 %v80_v16 }
  0x1f   :  { %517 = vmatprep.subr.mxu1 %v64_v17  ;;  %480 = vmatpush3.msra.mxu0 %v80_v16  ;;  %v290_v16 = vld [vmem:[%s764_s5 + $0x8] sm:$0xff] }
  0x20   :  { %518 = vmatpush3.msra.mxu1 %v64_v17  ;;  %481 = vmatprep.subr.mxu0 %v79_v18 }
  0x21   :  { %519 = vmatprep.subr.mxu1 %v63_v19  ;;  %482 = vmatpush3.msra.mxu0 %v79_v18 }
  0x22   :  { %520 = vmatpush3.msra.mxu1 %v63_v19  ;;  %483 = vmatprep.subr.mxu0 %v78_v20 }
  0x23   :  { %521 = vmatprep.subr.mxu1 %v62_v21  ;;  %484 = vmatpush3.msra.mxu0 %v78_v20 }
  0x24   :  { %522 = vmatpush3.msra.mxu1 %v62_v21  ;;  %485 = vmatprep.subr.mxu0 %v77_v23 }
  0x25   :  { %523 = vmatprep.subr.mxu1 %v61_v24  ;;  %486 = vmatpush3.msra.mxu0 %v77_v23 }
  0x26   :  { %524 = vmatpush3.msra.mxu1 %v61_v24  ;;  %487 = vmatprep.subr.mxu0 %v76_v25 }
  0x27   :  { %525 = vmatprep.subr.mxu1 %v60_v26  ;;  %488 = vmatpush3.msra.mxu0 %v76_v25 }
  0x28   :  { %526 = vmatpush3.msra.mxu1 %v60_v26  ;;  %489 = vmatprep.subr.mxu0 %v75_v30 }
  0x29   :  { %527 = vmatprep.subr.mxu1 %v59_v31  ;;  %490 = vmatpush3.msra.mxu0 %v75_v30 }
  0x2a   :  { %528 = vmatpush3.msra.mxu1 %v59_v31  ;;  %491 = vmatprep.subr.mxu0 %v74_v34 }
  0x2b   :  { %529 = vmatprep.subr.mxu1 %v58_v35  ;;  %492 = vmatpush3.msra.mxu0 %v74_v34 }
  0x2c   :  { %530 = vmatpush3.msra.mxu1 %v58_v35  ;;  %493 = vmatprep.subr.mxu0 %v73_v39 }
  0x2d   :  { %531 = vmatprep.subr.mxu1 %v57_v40  ;;  %494 = vmatpush3.msra.mxu0 %v73_v39 }
  0x2e   :  { %495 = vmatprep.mubr.f32.mxu0 %v673_v27  ;;  %532 = vmatpush3.msra.mxu1 %v57_v40 }
  0x2f   :  { %533 = vmatprep.mubr.f32.mxu1 %v56_v42  ;;  %496 = vmatmul.mubr.f32.vlgmr.msra.gmra.mxu0 %v688_v32 }
  0x30   :  { %534 = vmatmul.mubr.f32.vlgmr.msra.gmra.mxu1 %v55_v43  ;;  %498 = vmatprep.mubr.f32.mxu0 %v693_v33 }
  0x31   :  { %536 = vmatprep.mubr.f32.mxu1 %v54_v44  ;;  %300 = vperm.xlu0 %554, %v292_v47  }
  0x33   :  { %499 = vmatmul.mubr.f32.gmra.mxu0 %v678_v28 }
  0x34   :  { %537 = vmatmul.mubr.f32.gmra.mxu1 %v53_v45  ;;  %547 = vmatprep.mubr.msk.f32.mxu0 %vm303_vm1, %v289_v46 }
  0x35   :  { %295 = vperm.xlu0 %554, %v291_v49  }
  0xac   :  { %v301_v17 = vpop.permute.xlu0 %300 }
  0xb0   :  { %v296_v26 = vpop.permute.xlu0 %295 }
  0xef   :  { %v497_v50 = vpop.f32.mrf.mxu0 }
  0xf0   :  { %v535_v51 = vpop.f32.mrf.mxu1 }
  0xf1   :  { %v246_v53 = vadd.f32 %v535_v51, %v497_v50  ;;  %v155_v54 = vpop.f32.mrf.mxu0 }
  0xf2   :  { %v240_v55 = vpop.f32.mrf.mxu1 }
  0xf3   :  { %v267_v56 = vadd.f32 %v414_v52, %v246_v53  ;;  %v241_v57 = vadd.f32 %v240_v55, %v155_v54  ;;  %v500_v58 = vpop.f32.mrf.mxu0 }
  0xf4   :  { %v538_v59 = vpop.f32.mrf.mxu1 }
  0xf5   :  { %v271_v60 = vmax.f32 %v267_v56, 0.0  ;;  %v266_v61 = vadd.f32 %v414_v52, %v241_v57  ;;  %v256_v63 = vadd.f32 %v538_v59, %v500_v58  ;;  %v165_v0 = vpop.f32.mrf.mxu0 }
  0xf6   :  { %v250_v1 = vpop.f32.mrf.mxu1 }
  0xf7   :  { %v394_v2 = vmul.f32 0.1, %v271_v60  ;;  %v270_v3 = vmax.f32 %v266_v61, 0.0  ;;  %v269_v4 = vadd.f32 %v414_v52, %v256_v63  ;;  %v251_v5 = vadd.f32 %v250_v1, %v165_v0 }
  0xf9   :  { %v398_v6 = vadd.f32 %v394_v2, %v688_v32  ;;  %v284_v7 = vrot.slane %v270_v3, %v283_v62  ;;  %v273_v8 = vmax.f32 %v269_v4, 0.0  ;;  %v268_v9 = vadd.f32 %v414_v52, %v251_v5 }
  0xfb   :  { %402 = vst [vmem:[%s766_s7 + $0x8] sm:$0xff] %v398_v6  ;;  %v272_v10 = vmax.f32 %v268_v9, 0.0  ;;  %539 = vmatprep.subr.mxu0 %v273_v8  ;;  %v285_v11 = vsel %vm277_vm2, %v284_v7, %v270_v3 }
  0xfc   :  { %540 = vmatpush3.msra.mxu0 %v273_v8  ;;  %v393_v12 = vmul.f32 0.1, %v285_v11 }
  0xfd   :  { %v395_v13 = vmul.f32 0.1, %v272_v10  ;;  %541 = vmatprep.subr.mxu0 %v272_v10 }
  0xfe   :  { %542 = vmatpush3.msra.mxu0 %v272_v10  ;;  %v397_v14 = vadd.f32 %v393_v12, %v673_v27 }
  0xff   :  { %v399_v15 = vadd.f32 %v395_v13, %v693_v33  ;;  %543 = vmatprep.subr.mxu0 %v271_v60 }
 0x100   :  { %544 = vmatpush3.msra.mxu0 %v271_v60  ;;  %401 = vst [vmem:[%s766_s7] sm:$0xff] %v397_v14 }
 0x101   :  { %403 = vst [vmem:[%s766_s7 + $0x10] sm:$0xff] %v399_v15  ;;  %545 = vmatprep.subr.mxu0 %v285_v11 }
 0x102   :  { %546 = vmatpush3.msra.mxu0 %v285_v11 }
 0x103   :  { %548 = vmatmul.mubr.msk.f32.vlgmr.msra.gmra.mxu0 %vm303_vm1, %v290_v16 }
 0x1c3   :  { %v549_v18 = vpop.f32.mrf.mxu0 }
 0x1c4   :  { %v382_v19 = vadd.f32 %v549_v18, %v301_v17 }
 0x1c5   :  { %v376_v24 = vpop.f32.mrf.mxu0 }
 0x1c6   :  { %v385_v20 = vmul.f32 0.5, %v382_v19  ;;  %v377_v27 = vadd.f32 %v376_v24, %v296_v26 }
 0x1c8   :  { %v386_v21 = vmul.f32 1.442695, %v385_v20 }
 0x1ca   :  { %555 = vpow2.f32 %v386_v21 }
 0x1d7   :  { %v556_v23 = vpop.eup %555 }
 0x1d8   :  { %v389_v25 = vmul.f32 %v556_v23, %v388_v22 }
 0x1da   :  { %v390_v29 = vmul.f32 0.1, %v389_v25 }
 0x1dc   :  { %v391_v30 = vadd.f32 %v390_v29, %v377_v27 }
 0x1de   :  { %392 = vst [vmem:[%s767_s8] sm:$0xff] %v391_v30  ;;  %v396_v31 = vmul.f32 0.1, %v391_v30 }
 0x1e0   :  { %v400_v32 = vadd.f32 %v396_v31, %v678_v28 }
 0x1e2   :  { %404 = vst [vmem:[%s766_s7 + $0x18] sm:$0xff] %v400_v32 }
 0x1e3   :  { %413 = vsyncpa [#allocation3], 1 }

</bundles_post_ra>
